<compile_context>
chip_gen: v6e
topology: v6e:2x2x1
jax: 0.10.0
libtpu: 0.0.40
codegen_flags: <defaults>
</compile_context>

<pallas_src>
import jax
import jax.numpy as jnp
from jax.experimental import pallas as pl
from jax.experimental.pallas import tpu as pltpu


def _normalize_kernel(scale_ref, bias_ref, im_ref, out_ref):
    # scale_ref, bias_ref: SMEM f32[C]          (1/std, -mean/std)
    # im_ref:              VMEM f32[C, tile_H, W]
    # out_ref:             VMEM f32[C, tile_H, W]  (leading N=1 dim squeezed)
    C = im_ref.shape[0]
    for c in range(C):  # static unroll; C is tiny (e.g. 3)
        out_ref[c] = im_ref[c] * scale_ref[c] + bias_ref[c]


def _pick_tile_h(H, W, C, target_block_bytes=4 * 1024 * 1024):
    """Rows per block: whole image if small, else ~4 MiB sublane-aligned tiles.

    ~4 MiB per block => (2 input + 2 output) double-buffered blocks stay under
    ~16 MiB VMEM: safe on v7x (64 MiB physical) and v5e/v6e (128 MiB), while
    large enough to amortize the ~0.35 us per-grid-step overhead and hit the
    HBM roofline.
    """
    if C * H * W * 4 <= target_block_bytes:
        return H
    rows = target_block_bytes // (C * W * 4)
    rows = max(8, (rows // 8) * 8)  # keep sublane (second-to-last dim) multiple of 8
    return min(H, rows)


def rand_input_image_forward(im_chw, mean, std):
    """Forward of RandInputImage with the learnable image stored CHW.

    im_chw: f32[C, H, W] (parameter kept in CHW layout — layout plumbing only),
    mean, std: f32[C].  Returns f32[1, C, H, W] equal to the torch forward
    ((im_hwc - mean) / std).permute(2, 0, 1)[None].
    """
    C, H, W = im_chw.shape

    # Precompute per-channel affine once (tiny, C elements) -> fused MAD in kernel.
    scale = (1.0 / std).astype(jnp.float32)       # 1/std
    bias = (-mean * scale).astype(jnp.float32)    # -mean/std

    tile_h = _pick_tile_h(H, W, C)
    grid = (pl.cdiv(H, tile_h),)

    block_bytes = C * tile_h * W * 4
    cost = pl.CostEstimate(
        flops=2 * C * H * W,
        transcendentals=0,
        bytes_accessed=2 * C * H * W * 4 + 2 * C * 4,
    )

    out = pl.pallas_call(
        _normalize_kernel,
        out_shape=jax.ShapeDtypeStruct((1, C, H, W), jnp.float32),
        grid_spec=pltpu.PrefetchScalarGridSpec(
            num_scalar_prefetch=0,
            grid=grid,
            in_specs=[
                pl.BlockSpec(memory_space=pltpu.SMEM),            # scale (C,)
                pl.BlockSpec(memory_space=pltpu.SMEM),            # bias  (C,)
                pl.BlockSpec((C, tile_h, W), lambda h: (0, h, 0)),  # image slab
            ],
            # Leading N=1 dim squeezed out of the kernel view.
            out_specs=pl.BlockSpec((None, C, tile_h, W), lambda h: (0, 0, h, 0)),
        ),
        compiler_params=pltpu.CompilerParams(
            # H-tile axis is independent work: parallel lets v7x shard it
            # across both TensorCores (no-op on single-TC v5e/v6e).
            dimension_semantics=("parallel",),
            # Headroom above default scoped VMEM, still < v7x 64 MiB physical.
            vmem_limit_bytes=min(48 * 1024 * 1024, max(8 * 1024 * 1024, 6 * block_bytes)),
        ),
        cost_estimate=cost,
    )(scale, bias, im_chw)
    return out


if __name__ == "__main__":
    # Small shape consistent with the module's (H, W, C) convention.
    # W multiple of 128 -> lane-dense stores; H multiple of 8 -> sublane aligned.
    H, W, C = 48, 256, 3

    key = jax.random.PRNGKey(0)
    k_im, k_mean, k_std = jax.random.split(key, 3)

    # Deterministic "parameter" (torch.rand analogue) and per-channel stats.
    im_hwc = jax.random.uniform(k_im, (H, W, C), dtype=jnp.float32)
    mean = jax.random.uniform(k_mean, (C,), dtype=jnp.float32)
    std = jax.random.uniform(k_std, (C,), dtype=jnp.float32) + 0.5  # keep away from 0

    # One-time layout choice at parameter init (not a per-forward cost):
    # store the learnable image in CHW so forward is a single streaming pass.
    im_chw = jnp.transpose(im_hwc, (2, 0, 1))

    out = rand_input_image_forward(im_chw, mean, std)
    out = jax.block_until_ready(out)

    # Reference in plain JAX, computed exactly the way the torch module does.
    ref = jnp.transpose((im_hwc - mean[None, None, :]) / std[None, None, :],
                        (2, 0, 1))[None]  # (1, C, H, W)
    assert out.shape == (1, C, H, W), out.shape
    assert out.dtype == jnp.float32
    assert jnp.allclose(out, ref, atol=1e-5, rtol=1e-5), "mismatch vs reference"

    print("KERNEL_OK")
</pallas_src>

<mosaic_0001>
module attributes {stable_mosaic.version = 11 : i64} {
  func.func @_normalize_kernel(%arg0: i32, %arg1: memref<3xf32, #tpu.memory_space<smem>>, %arg2: memref<3xf32, #tpu.memory_space<smem>>, %arg3: memref<3x48x256xf32, #tpu.memory_space<vmem>>, %arg4: memref<1x3x48x256xf32, #tpu.memory_space<vmem>>) attributes {dimension_semantics = [#tpu.dimension_semantics<parallel>], iteration_bounds = array<i64: 1>, scalar_prefetch = 0 : i64, scratch_operands = 0 : i64, tpu.core_type = #tpu.core_type<tc>, window_params = [{transform_indices = @transform_0, window_bounds = array<i64: 3>}, {transform_indices = @transform_1, window_bounds = array<i64: 3>}, {transform_indices = @transform_2, window_bounds = array<i64: 3, 48, 256>}, {transform_indices = @transform_3, window_bounds = array<i64: 1, 3, 48, 256>}]} {
    %c0 = arith.constant 0 : index
    %c0_0 = arith.constant 0 : index
    %c0_1 = arith.constant 0 : index
    %0 = vector.load %arg3[%c0, %c0_0, %c0_1] : memref<3x48x256xf32, #tpu.memory_space<vmem>>, vector<1x48x256xf32>
    %1 = vector.shape_cast %0 : vector<1x48x256xf32> to vector<48x256xf32>
    %c0_2 = arith.constant 0 : index
    %2 = memref.load %arg1[%c0_2] : memref<3xf32, #tpu.memory_space<smem>>
    %3 = vector.broadcast %2 : f32 to vector<48x256xf32>
    %4 = arith.mulf %1, %3 : vector<48x256xf32>
    %c0_3 = arith.constant 0 : index
    %5 = memref.load %arg2[%c0_3] : memref<3xf32, #tpu.memory_space<smem>>
    %6 = vector.broadcast %5 : f32 to vector<48x256xf32>
    %7 = arith.addf %4, %6 : vector<48x256xf32>
    %c0_4 = arith.constant 0 : index
    %c0_5 = arith.constant 0 : index
    %c0_6 = arith.constant 0 : index
    %c0_7 = arith.constant 0 : index
    %8 = vector.load %arg4[%c0_4, %c0_5, %c0_6, %c0_7] : memref<1x3x48x256xf32, #tpu.memory_space<vmem>>, vector<1x1x48x256xf32>
    %9 = vector.shape_cast %8 : vector<1x1x48x256xf32> to vector<48x256xf32>
    %10 = vector.shape_cast %7 : vector<48x256xf32> to vector<1x1x48x256xf32>
    tpu.vector_store %arg4[%c0_4, %c0_5, %c0_6, %c0_7], %10 {strides = array<i32>} : memref<1x3x48x256xf32, #tpu.memory_space<vmem>>, vector<1x1x48x256xf32>,
    %c1 = arith.constant 1 : index
    %c0_8 = arith.constant 0 : index
    %c0_9 = arith.constant 0 : index
    %11 = vector.load %arg3[%c1, %c0_8, %c0_9] : memref<3x48x256xf32, #tpu.memory_space<vmem>>, vector<1x48x256xf32>
    %12 = vector.shape_cast %11 : vector<1x48x256xf32> to vector<48x256xf32>
    %c1_10 = arith.constant 1 : index
    %13 = memref.load %arg1[%c1_10] : memref<3xf32, #tpu.memory_space<smem>>
    %14 = vector.broadcast %13 : f32 to vector<48x256xf32>
    %15 = arith.mulf %12, %14 : vector<48x256xf32>
    %c1_11 = arith.constant 1 : index
    %16 = memref.load %arg2[%c1_11] : memref<3xf32, #tpu.memory_space<smem>>
    %17 = vector.broadcast %16 : f32 to vector<48x256xf32>
    %18 = arith.addf %15, %17 : vector<48x256xf32>
    %c0_12 = arith.constant 0 : index
    %c1_13 = arith.constant 1 : index
    %c0_14 = arith.constant 0 : index
    %c0_15 = arith.constant 0 : index
    %19 = vector.load %arg4[%c0_12, %c1_13, %c0_14, %c0_15] : memref<1x3x48x256xf32, #tpu.memory_space<vmem>>, vector<1x1x48x256xf32>
    %20 = vector.shape_cast %19 : vector<1x1x48x256xf32> to vector<48x256xf32>
    %21 = vector.shape_cast %18 : vector<48x256xf32> to vector<1x1x48x256xf32>
    tpu.vector_store %arg4[%c0_12, %c1_13, %c0_14, %c0_15], %21 {strides = array<i32>} : memref<1x3x48x256xf32, #tpu.memory_space<vmem>>, vector<1x1x48x256xf32>,
    %c2 = arith.constant 2 : index
    %c0_16 = arith.constant 0 : index
    %c0_17 = arith.constant 0 : index
    %22 = vector.load %arg3[%c2, %c0_16, %c0_17] : memref<3x48x256xf32, #tpu.memory_space<vmem>>, vector<1x48x256xf32>
    %23 = vector.shape_cast %22 : vector<1x48x256xf32> to vector<48x256xf32>
    %c2_18 = arith.constant 2 : index
    %24 = memref.load %arg1[%c2_18] : memref<3xf32, #tpu.memory_space<smem>>
    %25 = vector.broadcast %24 : f32 to vector<48x256xf32>
    %26 = arith.mulf %23, %25 : vector<48x256xf32>
    %c2_19 = arith.constant 2 : index
    %27 = memref.load %arg2[%c2_19] : memref<3xf32, #tpu.memory_space<smem>>
    %28 = vector.broadcast %27 : f32 to vector<48x256xf32>
    %29 = arith.addf %26, %28 : vector<48x256xf32>
    %c0_20 = arith.constant 0 : index
    %c2_21 = arith.constant 2 : index
    %c0_22 = arith.constant 0 : index
    %c0_23 = arith.constant 0 : index
    %30 = vector.load %arg4[%c0_20, %c2_21, %c0_22, %c0_23] : memref<1x3x48x256xf32, #tpu.memory_space<vmem>>, vector<1x1x48x256xf32>
    %31 = vector.shape_cast %30 : vector<1x1x48x256xf32> to vector<48x256xf32>
    %32 = vector.shape_cast %29 : vector<48x256xf32> to vector<1x1x48x256xf32>
    tpu.vector_store %arg4[%c0_20, %c2_21, %c0_22, %c0_23], %32 {strides = array<i32>} : memref<1x3x48x256xf32, #tpu.memory_space<vmem>>, vector<1x1x48x256xf32>,
    return
  }
  func.func @transform_0(%arg0: i32) -> i32 {
    %c0_i32 = arith.constant 0 : i32
    %c0_i32_0 = arith.constant 0 : i32
    return %c0_i32 : i32
  }
  func.func @transform_1(%arg0: i32) -> i32 {
    %c0_i32 = arith.constant 0 : i32
    %c0_i32_0 = arith.constant 0 : i32
    return %c0_i32 : i32
  }
  func.func @transform_2(%arg0: i32) -> (i32, i32, i32) {
    %c0_i32 = arith.constant 0 : i32
    %c0_i32_0 = arith.constant 0 : i32
    %c0_i32_1 = arith.constant 0 : i32
    return %c0_i32, %arg0, %c0_i32_0 : i32, i32, i32
  }
  func.func @transform_3(%arg0: i32) -> (i32, i32, i32, i32) {
    %c0_i32 = arith.constant 0 : i32
    %c0_i32_0 = arith.constant 0 : i32
    %c0_i32_1 = arith.constant 0 : i32
    %c0_i32_2 = arith.constant 0 : i32
    return %c0_i32, %c0_i32_0, %arg0, %c0_i32_1 : i32, i32, i32, i32
  }
}

</mosaic_0001>

<bundles_post_ra>
// kernel: tpu_custom_call.1
= control target key start
LH: loop header
LB: loop body
LE: loop exit
PB: predicated region body
PF: predicated region fallthrough
CT: control target
= control target key end

     0   :  { %8 = vsyncpa [#allocation5], 0  ;;  %s379_s0 = inlined_call_operand.hbm [shape: f32[3], index: 0, kind: input, shape index: {}]   ;;  %s380_s1 = inlined_call_operand.vmem [shape: f32[3], index: 1, kind: input, shape index: {}]   ;;  %s381_s2 = inlined_call_operand.hbm [shape: f32[3,48,256], index: 2, kind: input, shape index: {}]   ;;  %s382_s3 = inlined_call_operand.hbm [shape: f32[1,3,48,256], index: 3, kind: output, shape index: {}]  }
   0x1   :  { %9 = vsyncpa [#allocation6], 0 }
   0x2   :  { %10 = vsyncpa [#allocation3], 0 }
   0x3   :  { %11 = vsyncpa [#allocation4], 0  ;;  %s26_s14 = sshll.u32 %s380_s1, 4  ;;  %s309_s15 = smov [#allocation2]   ;;  %s27_s14 = int_to_ptr.vmem [resolvable:$true] %s26_s14 }
   0x4   :  { %19 = dma.hbm_to_smem %s379_s0, 16, %s309_s15, [#allocation5]  }
   0x5   :  { %s249_s18 = scalar_lea.vmem %s27_s14, 16  ;;  %p254_p1 = scmp.lt.s32.totalorder %s27_s14, %s27_s14 }
   0x6   :  { %p250_p0 = scmp.ne.s32.totalorder %s27_s14, %s249_s18  ;;  %p255_p2 = scmp.lt.s32.totalorder %s249_s18, %s249_s18 }
   0x8   :  { %p256_p3 = por %p255_p2, %p254_p1 }
   0xa   :  { %p257_p4 = pnand %p256_p3, %p250_p0 }
   0xc   :  { %260 = shalt.err (!%p257_p4)
}
   0xd   :  { %s310_s19 = smov [#allocation7]   ;;  %s311_s20 = smov [#allocation8]  }
   0xe   :  { %29 = dma.vmem_to_smem %s27_s14, 16, %s310_s19, [#allocation6]  }
   0xf   :  { %s35_s21 = sshll.u32 %s311_s20, 4  ;;  %s36_s21 = int_to_ptr.vmem [resolvable:$true] %s35_s21 }
  0x10   :  { %s269_s22 = scalar_lea.vmem %s36_s21, 4608  ;;  %p274_p6 = scmp.lt.s32.totalorder %s36_s21, %s36_s21 }
  0x11   :  { %p270_p5 = scmp.ne.s32.totalorder %s36_s21, %s269_s22  ;;  %p275_p7 = scmp.lt.s32.totalorder %s269_s22, %s269_s22 }
  0x13   :  { %p276_p8 = por %p275_p7, %p274_p6 }
  0x15   :  { %p277_p9 = pnand %p276_p8, %p270_p5 }
  0x17   :  { %280 = shalt.err (!%p277_p9)
}
  0x18   :  { %s312_s0 = smov 256   ;;  %s313_s1 = smov 16  }
  0x19   :  { %41 = dma.hbm_to_vmem [thread:$0]  %s381_s2, 4608, %s36_s21, [#allocation3], %s312_s0, %s312_s0, %s313_s1  }
  0x1a   :  { %301 = dma.done.wait [#allocation5], 16  }
  0x1b   :  { %302 = vsyncadd [#allocation5], 4294967280 }
  0x1c   :  { %303 = dma.done.wait [#allocation6], 16  }
  0x1d   :  { %304 = vsyncadd [#allocation6], 4294967280 }
  0x1e   :  { %305 = dma.done.wait [#allocation3], 4608  }
  0x1f   :  { %306 = vsyncadd [#allocation3], 4294962688 }
  0x20   :  { %51 = sfence }
  0x21   :  { %s64_s25 = sld [smem:[#allocation2]]  ;;  %v52_v0 = vld [vmem:[#allocation8] sm:$0xff]  ;;  %v53_v1 = vld [vmem:[#allocation8 + $0x8] sm:$0xff]  ;;  %v54_v2 = vld [vmem:[#allocation8 + $0x10] sm:$0xff]  ;;  %s314_s30 = smov [#allocation9]  }
  0x22   :  { %s78_s26 = sld [smem:[#allocation7]]  ;;  %v55_v3 = vld [vmem:[#allocation8 + $0x18] sm:$0xff]  ;;  %v56_v4 = vld [vmem:[#allocation8 + $0x20] sm:$0xff]  ;;  %v57_v5 = vld [vmem:[#allocation8 + $0x28] sm:$0xff]  ;;  %s217_s4 = sshll.u32 %s314_s30, 4  ;;  %s218_s4 = int_to_ptr.vmem [resolvable:$true] %s217_s4 }
  0x23   :  { %s347_s27 = sld [smem:[#allocation2 + $0x1]]  ;;  %v58_v6 = vld [vmem:[#allocation8 + $0x30] sm:$0xff]  ;;  %v59_v8 = vld [vmem:[#allocation8 + $0x38] sm:$0xff]  ;;  %v60_v17 = vld [vmem:[#allocation8 + $0x40] sm:$0xff]  ;;  %s281_s5 = scalar_lea.vmem %s218_s4, 4608 }
  0x24   :  { %s349_s28 = sld [smem:[#allocation7 + $0x1]]  ;;  %v61_v18 = vld [vmem:[#allocation8 + $0x48] sm:$0xff]  ;;  %v62_v19 = vld [vmem:[#allocation8 + $0x50] sm:$0xff]  ;;  %v63_v24 = vld [vmem:[#allocation8 + $0x58] sm:$0xff]  ;;  %p282_p10 = scmp.ne.s32.totalorder %s218_s4, %s281_s5 }
  0x25   :  { %s351_s29 = sld [smem:[#allocation2 + $0x2]]  ;;  %v105_v29 = vld [vmem:[#allocation8 + $0x60] sm:$0xff]  ;;  %v106_v34 = vld [vmem:[#allocation8 + $0x68] sm:$0xff]  ;;  %v107_v35 = vld [vmem:[#allocation8 + $0x70] sm:$0xff]  ;;  %p286_p11 = scmp.lt.s32.totalorder %s218_s4, %s218_s4 }
  0x26   :  { %v108_v36 = vld [vmem:[#allocation8 + $0x78] sm:$0xff]  ;;  %s353_s2 = sld [smem:[#allocation7 + $0x2]]  ;;  %v109_v40 = vld [vmem:[#allocation8 + $0x80] sm:$0xff]  ;;  %v110_v41 = vld [vmem:[#allocation8 + $0x88] sm:$0xff]  ;;  %p287_p12 = scmp.lt.s32.totalorder %s281_s5, %s281_s5 }
  0x27   :  { %v65_v7 = vstv %s64_s25  ;;  %v111_v42 = vld [vmem:[#allocation8 + $0x90] sm:$0xff]  ;;  %v112_v48 = vld [vmem:[#allocation8 + $0x98] sm:$0xff]  ;;  %v113_v53 = vld [vmem:[#allocation8 + $0xa0] sm:$0xff] }
  0x28   :  { %v66_v9 = vmul.f32 %v65_v7, %v52_v0  ;;  %v79_v10 = vstv %s78_s26  ;;  %v67_v11 = vmul.f32 %v65_v7, %v53_v1  ;;  %v68_v12 = vmul.f32 %v65_v7, %v54_v2  ;;  %v114_v58 = vld [vmem:[#allocation8 + $0xa8] sm:$0xff]  ;;  %v115_v59 = vld [vmem:[#allocation8 + $0xb0] sm:$0xff]  ;;  %v116_v60 = vld [vmem:[#allocation8 + $0xb8] sm:$0xff]  ;;  %p288_p13 = por %p287_p12, %p286_p11 }
  0x29   :  { %v69_v13 = vmul.f32 %v65_v7, %v55_v3  ;;  %v70_v14 = vmul.f32 %v65_v7, %v56_v4  ;;  %v71_v15 = vmul.f32 %v65_v7, %v57_v5  ;;  %v72_v16 = vmul.f32 %v65_v7, %v58_v6  ;;  %v159_v1 = vld [vmem:[#allocation8 + $0xc0] sm:$0xff]  ;;  %v160_v2 = vld [vmem:[#allocation8 + $0xc8] sm:$0xff] }
  0x2a   :  { %v80_v20 = vadd.f32 %v79_v10, %v66_v9  ;;  %v81_v21 = vadd.f32 %v79_v10, %v67_v11  ;;  %v82_v22 = vadd.f32 %v79_v10, %v68_v12  ;;  %v73_v23 = vmul.f32 %v65_v7, %v59_v8  ;;  %v162_v12 = vld [vmem:[#allocation8 + $0xd8] sm:$0xff]  ;;  %p289_p0 = pnand %p288_p13, %p282_p10 }
  0x2b   :  { %v83_v25 = vadd.f32 %v79_v10, %v69_v13  ;;  %v84_v26 = vadd.f32 %v79_v10, %v70_v14  ;;  %v85_v27 = vadd.f32 %v79_v10, %v71_v15  ;;  %v86_v28 = vadd.f32 %v79_v10, %v72_v16  ;;  %v163_v13 = vld [vmem:[#allocation8 + $0xe0] sm:$0xff] }
  0x2c   :  { %92 = vst [vmem:[#allocation9] sm:$0xff] %v80_v20  ;;  %93 = vst [vmem:[#allocation9 + $0x8] sm:$0xff] %v81_v21  ;;  %v87_v30 = vadd.f32 %v79_v10, %v73_v23  ;;  %v74_v31 = vmul.f32 %v65_v7, %v60_v17  ;;  %v75_v32 = vmul.f32 %v65_v7, %v61_v18  ;;  %v118_v38 = vstv %s347_s27  ;;  %v164_v18 = vld [vmem:[#allocation8 + $0xe8] sm:$0xff]  ;;  %v166_v20 = vld [vmem:[#allocation8 + $0xf8] sm:$0xff] }
  0x2d   :  { %94 = vst [vmem:[#allocation9 + $0x10] sm:$0xff] %v82_v22  ;;  %v76_v33 = vmul.f32 %v65_v7, %v62_v19  ;;  %95 = vst [vmem:[#allocation9 + $0x18] sm:$0xff] %v83_v25  ;;  %v77_v37 = vmul.f32 %v65_v7, %v63_v24  ;;  %v132_v39 = vstv %s349_s28  ;;  %v358_v43 = vstv %s351_s29  ;;  %v161_v7 = vld [vmem:[#allocation8 + $0xd0] sm:$0xff]  ;;  %v167_v25 = vld [vmem:[#allocation8 + $0x100] sm:$0xff] }
  0x2e   :  { %96 = vst [vmem:[#allocation9 + $0x20] sm:$0xff] %v84_v26  ;;  %97 = vst [vmem:[#allocation9 + $0x28] sm:$0xff] %v85_v27  ;;  %v88_v44 = vadd.f32 %v79_v10, %v74_v31  ;;  %v89_v45 = vadd.f32 %v79_v10, %v75_v32  ;;  %v119_v47 = vmul.f32 %v118_v38, %v105_v29  ;;  %v186_v16 = vstv %s353_s2  ;;  %v165_v19 = vld [vmem:[#allocation8 + $0xf0] sm:$0xff]  ;;  %v168_v26 = vld [vmem:[#allocation8 + $0x108] sm:$0xff] }
  0x2f   :  { %98 = vst [vmem:[#allocation9 + $0x30] sm:$0xff] %v86_v28  ;;  %99 = vst [vmem:[#allocation9 + $0x38] sm:$0xff] %v87_v30  ;;  %v90_v46 = vadd.f32 %v79_v10, %v76_v33  ;;  %v91_v49 = vadd.f32 %v79_v10, %v77_v37  ;;  %v120_v50 = vmul.f32 %v118_v38, %v106_v34  ;;  %v169_v31 = vld [vmem:[#allocation8 + $0x110] sm:$0xff] }
  0x30   :  { %v121_v51 = vmul.f32 %v118_v38, %v107_v35  ;;  %v122_v52 = vmul.f32 %v118_v38, %v108_v36  ;;  %100 = vst [vmem:[#allocation9 + $0x40] sm:$0xff] %v88_v44  ;;  %101 = vst [vmem:[#allocation9 + $0x48] sm:$0xff] %v89_v45  ;;  %v133_v54 = vadd.f32 %v132_v39, %v119_v47  ;;  %v170_v36 = vld [vmem:[#allocation8 + $0x118] sm:$0xff] }
  0x31   :  { %102 = vst [vmem:[#allocation9 + $0x50] sm:$0xff] %v90_v46  ;;  %v123_v55 = vmul.f32 %v118_v38, %v109_v40  ;;  %v124_v56 = vmul.f32 %v118_v38, %v110_v41  ;;  %v125_v57 = vmul.f32 %v118_v38, %v111_v42  ;;  %103 = vst [vmem:[#allocation9 + $0x58] sm:$0xff] %v91_v49 }
  0x32   :  { %v134_v61 = vadd.f32 %v132_v39, %v120_v50  ;;  %v135_v62 = vadd.f32 %v132_v39, %v121_v51  ;;  %v136_v63 = vadd.f32 %v132_v39, %v122_v52  ;;  %v126_v0 = vmul.f32 %v118_v38, %v112_v48  ;;  %146 = vst [vmem:[#allocation9 + $0x60] sm:$0xff] %v133_v54 }
  0x33   :  { %v137_v3 = vadd.f32 %v132_v39, %v123_v55  ;;  %v138_v4 = vadd.f32 %v132_v39, %v124_v56  ;;  %v139_v5 = vadd.f32 %v132_v39, %v125_v57  ;;  %v127_v6 = vmul.f32 %v118_v38, %v113_v53 }
  0x34   :  { %147 = vst [vmem:[#allocation9 + $0x68] sm:$0xff] %v134_v61  ;;  %148 = vst [vmem:[#allocation9 + $0x70] sm:$0xff] %v135_v62  ;;  %v140_v8 = vadd.f32 %v132_v39, %v126_v0  ;;  %v128_v9 = vmul.f32 %v118_v38, %v114_v58  ;;  %v129_v10 = vmul.f32 %v118_v38, %v115_v59 }
  0x35   :  { %149 = vst [vmem:[#allocation9 + $0x78] sm:$0xff] %v136_v63  ;;  %v130_v11 = vmul.f32 %v118_v38, %v116_v60  ;;  %150 = vst [vmem:[#allocation9 + $0x80] sm:$0xff] %v137_v3  ;;  %v141_v14 = vadd.f32 %v132_v39, %v127_v6  ;;  %v173_v15 = vmul.f32 %v358_v43, %v159_v1 }
  0x36   :  { %151 = vst [vmem:[#allocation9 + $0x88] sm:$0xff] %v138_v4  ;;  %152 = vst [vmem:[#allocation9 + $0x90] sm:$0xff] %v139_v5  ;;  %v174_v17 = vmul.f32 %v358_v43, %v160_v2  ;;  %v142_v21 = vadd.f32 %v132_v39, %v128_v9  ;;  %v143_v22 = vadd.f32 %v132_v39, %v129_v10 }
  0x37   :  { %153 = vst [vmem:[#allocation9 + $0x98] sm:$0xff] %v140_v8  ;;  %v144_v23 = vadd.f32 %v132_v39, %v130_v11  ;;  %v175_v24 = vmul.f32 %v358_v43, %v161_v7  ;;  %154 = vst [vmem:[#allocation9 + $0xa0] sm:$0xff] %v141_v14  ;;  %v187_v27 = vadd.f32 %v186_v16, %v173_v15 }
  0x38   :  { %v188_v28 = vadd.f32 %v186_v16, %v174_v17  ;;  %v176_v29 = vmul.f32 %v358_v43, %v162_v12  ;;  %v177_v30 = vmul.f32 %v358_v43, %v163_v13  ;;  %155 = vst [vmem:[#allocation9 + $0xa8] sm:$0xff] %v142_v21  ;;  %156 = vst [vmem:[#allocation9 + $0xb0] sm:$0xff] %v143_v22 }
  0x39   :  { %157 = vst [vmem:[#allocation9 + $0xb8] sm:$0xff] %v144_v23  ;;  %v189_v32 = vadd.f32 %v186_v16, %v175_v24  ;;  %v178_v33 = vmul.f32 %v358_v43, %v164_v18  ;;  %v179_v34 = vmul.f32 %v358_v43, %v165_v19  ;;  %v180_v35 = vmul.f32 %v358_v43, %v166_v20 }
  0x3a   :  { %200 = vst [vmem:[#allocation9 + $0xc0] sm:$0xff] %v187_v27  ;;  %201 = vst [vmem:[#allocation9 + $0xc8] sm:$0xff] %v188_v28  ;;  %v190_v37 = vadd.f32 %v186_v16, %v176_v29  ;;  %v191_v38 = vadd.f32 %v186_v16, %v177_v30  ;;  %v181_v39 = vmul.f32 %v358_v43, %v167_v25 }
  0x3b   :  { %v182_v40 = vmul.f32 %v358_v43, %v168_v26  ;;  %202 = vst [vmem:[#allocation9 + $0xd0] sm:$0xff] %v189_v32  ;;  %v192_v41 = vadd.f32 %v186_v16, %v178_v33  ;;  %v193_v42 = vadd.f32 %v186_v16, %v179_v34  ;;  %v194_v44 = vadd.f32 %v186_v16, %v180_v35 }
  0x3c   :  { %v183_v45 = vmul.f32 %v358_v43, %v169_v31  ;;  %203 = vst [vmem:[#allocation9 + $0xd8] sm:$0xff] %v190_v37  ;;  %204 = vst [vmem:[#allocation9 + $0xe0] sm:$0xff] %v191_v38  ;;  %v195_v46 = vadd.f32 %v186_v16, %v181_v39  ;;  %v184_v48 = vmul.f32 %v358_v43, %v170_v36 }
  0x3d   :  { %v196_v47 = vadd.f32 %v186_v16, %v182_v40  ;;  %205 = vst [vmem:[#allocation9 + $0xe8] sm:$0xff] %v192_v41  ;;  %206 = vst [vmem:[#allocation9 + $0xf0] sm:$0xff] %v193_v42 }
  0x3e   :  { %207 = vst [vmem:[#allocation9 + $0xf8] sm:$0xff] %v194_v44  ;;  %v197_v49 = vadd.f32 %v186_v16, %v183_v45  ;;  %208 = vst [vmem:[#allocation9 + $0x100] sm:$0xff] %v195_v46  ;;  %v198_v50 = vadd.f32 %v186_v16, %v184_v48 }
  0x3f   :  { %209 = vst [vmem:[#allocation9 + $0x108] sm:$0xff] %v196_v47 }
  0x40   :  { %210 = vst [vmem:[#allocation9 + $0x110] sm:$0xff] %v197_v49  ;;  %211 = vst [vmem:[#allocation9 + $0x118] sm:$0xff] %v198_v50 }
  0x41   :  { %292 = shalt.err (!%p289_p0)
}
  0x42   :  { %223 = dma.vmem_to_hbm [thread:$0]  %s218_s4, 4608, %s382_s3, [#allocation4], %s312_s0, %s312_s0, %s313_s1  }
  0x43   :  { %307 = dma.done.wait [#allocation4], 4608  }
  0x44   :  { %308 = vsyncadd [#allocation4], 4294962688 }
  0x45   :  { %227 = vsyncpa [#allocation3], 1 }
  0x46   :  { %228 = vsyncpa [#allocation4], 1 }
  0x47   :  { %229 = vsyncpa [#allocation5], 1 }
  0x48   :  { %230 = vsyncpa [#allocation6], 1 }

</bundles_post_ra>
